<compile_context>
chip_gen: v6e
topology: v6e:2x2x1
jax: 0.10.0
libtpu: 0.0.40
codegen_flags: <defaults>
</compile_context>

<pallas_src>
import jax
import jax.numpy as jnp
import numpy as np
from jax.experimental import pallas as pl
from jax.experimental.pallas import tpu as pltpu

_LANE = 128
_SUBLANE = 8
_SPLIT_ROWS = 1024  # batches >= this (and <= max tile) get split into 2 grid steps


def _round_up(x, m):
    return ((x + m - 1) // m) * m


def _mlp_kernel(x_ref, w1_ref, b1_ref, w2_ref, b2_ref, w3_ref, b3_ref, o_ref):
    # x: (tile, state_dim) f32 -> bf16 in-kernel; w*: bf16; b*: f32; o: (tile, 128) f32.
    x = x_ref[...].astype(jnp.bfloat16)
    h1 = jnp.dot(x, w1_ref[...], preferred_element_type=jnp.float32) + b1_ref[...]
    h1 = jnp.maximum(h1, 0.0).astype(jnp.bfloat16)
    h2 = jnp.dot(h1, w2_ref[...], preferred_element_type=jnp.float32) + b2_ref[...]
    h2 = jnp.maximum(h2, 0.0).astype(jnp.bfloat16)
    out = jnp.dot(h2, w3_ref[...], preferred_element_type=jnp.float32) + b3_ref[...]
    o_ref[...] = out.astype(o_ref.dtype)


def prepare_params(params):
    """One-time prep: bf16 weights, f32 biases, action_dim zero-padded to 128 lanes.

    Call this once when parameters are created/updated, NOT per forward call.
    Returns (w1b, b1f, w2b, b2f, w3p, b3p).
    """
    w1, b1, w2, b2, w3, b3 = params
    hidden_dim = w1.shape[1]
    action_dim = w3.shape[1]
    out_dim = max(_LANE, _round_up(action_dim, _LANE))

    w3p = jnp.zeros((hidden_dim, out_dim), jnp.bfloat16)
    w3p = w3p.at[:, :action_dim].set(w3.astype(jnp.bfloat16))
    b3p = jnp.zeros((1, out_dim), jnp.float32)
    b3p = b3p.at[:, :action_dim].set(jnp.reshape(b3.astype(jnp.float32), (1, -1)))

    return (
        w1.astype(jnp.bfloat16),
        jnp.reshape(b1.astype(jnp.float32), (1, -1)),
        w2.astype(jnp.bfloat16),
        jnp.reshape(b2.astype(jnp.float32), (1, -1)),
        w3p,
        b3p,
    )


def dqn_value_network_forward(state, prepared, action_dim, *, max_batch_tile=2048):
    """Q-values for all actions. state: (B, state_dim) f32 -> (B, action_dim) f32."""
    w1b, b1f, w2b, b2f, w3p, b3p = prepared
    B, state_dim = state.shape
    hidden_dim = w1b.shape[1]
    out_dim = w3p.shape[1]

    # ---- batch tiling --------------------------------------------------------
    b8 = _round_up(B, _SUBLANE)
    if b8 > max_batch_tile:
        batch_tile = max_batch_tile
    elif b8 >= _SPLIT_ROWS:
        # Large-but-single-tile batch: force >=2 grid steps so v7x's second
        # TensorCore participates (dimension_semantics="parallel").
        batch_tile = _round_up(pl.cdiv(b8, 2), _SUBLANE)
    else:
        batch_tile = b8
    grid_b = pl.cdiv(B, batch_tile)

    x_map = lambda i: (i, 0)
    w_map = lambda i: (0, 0)  # grid-invariant -> weights stay resident in VMEM

    out = pl.pallas_call(
        _mlp_kernel,
        out_shape=jax.ShapeDtypeStruct((B, out_dim), jnp.float32),
        grid=(grid_b,),
        in_specs=[
            pl.BlockSpec((batch_tile, state_dim), x_map),
            pl.BlockSpec((state_dim, hidden_dim), w_map),
            pl.BlockSpec((1, hidden_dim), w_map),
            pl.BlockSpec((hidden_dim, hidden_dim), w_map),
            pl.BlockSpec((1, hidden_dim), w_map),
            pl.BlockSpec((hidden_dim, out_dim), w_map),
            pl.BlockSpec((1, out_dim), w_map),
        ],
        out_specs=pl.BlockSpec((batch_tile, out_dim), x_map),
        compiler_params=pltpu.CompilerParams(
            dimension_semantics=("parallel",),
            vmem_limit_bytes=64 * 1024 * 1024,  # big tiles fit v5e's scoped VMEM too
        ),
    )(state.astype(jnp.float32), w1b, b1f, w2b, b2f, w3p, b3p)

    # Padded columns are exactly 0.0; slice them off so downstream argmax/max
    # over the returned Q-values is always correct.
    # TODO(synk): for action-selection-only callers, fuse max/argmax into the
    # kernel and emit (B, 1) outputs to cut output HBM traffic ~100x.
    return out[:, :action_dim]


def init_params(key, state_dim=13, hidden_dim=128, action_dim=11):
    """Deterministic xavier-uniform weights (zero biases), matching create_qnet."""
    k1, k2, k3 = jax.random.split(key, 3)

    def xavier(k, fan_in, fan_out):
        bound = np.sqrt(6.0 / (fan_in + fan_out))
        return jax.random.uniform(
            k, (fan_in, fan_out), jnp.float32, minval=-bound, maxval=bound
        )

    w1 = xavier(k1, state_dim, hidden_dim)
    b1 = jnp.zeros((1, hidden_dim), jnp.float32)
    w2 = xavier(k2, hidden_dim, hidden_dim)
    b2 = jnp.zeros((1, hidden_dim), jnp.float32)
    w3 = xavier(k3, hidden_dim, action_dim)
    b3 = jnp.zeros((1, action_dim), jnp.float32)
    return (w1, b1, w2, b2, w3, b3)


def _reference_forward_f32(state, params):
    """Pure-f32 reference matching the original torch module semantics."""
    w1, b1, w2, b2, w3, b3 = params
    h1 = jnp.maximum(state @ w1 + b1, 0.0)
    h2 = jnp.maximum(h1 @ w2 + b2, 0.0)
    return h2 @ w3 + b3


if __name__ == "__main__":
    key = jax.random.PRNGKey(0)
    pkey, xkey = jax.random.split(key)

    state_dim, action_dim, hidden_dim = 13, 11, 128
    batch = 32  # docstring example: batch of 32 states

    params = init_params(pkey, state_dim, hidden_dim, action_dim)
    prepared = prepare_params(params)  # one-time weight prep (hoisted per review)

    fwd = jax.jit(lambda s: dqn_value_network_forward(s, prepared, action_dim))

    state = jax.random.normal(xkey, (batch, state_dim), jnp.float32)
    q_values = jax.block_until_ready(fwd(state))
    assert q_values.shape == (batch, action_dim)

    ref = _reference_forward_f32(state, params)
    # bf16 weights/activations (f32 accumulate) vs pure-f32 reference.
    np.testing.assert_allclose(np.asarray(q_values), np.asarray(ref),
                               rtol=5e-2, atol=5e-2)

    # Ragged batch (exercises the clipped final block; no padding, no assert).
    state5 = jax.random.normal(jax.random.PRNGKey(1), (5, state_dim), jnp.float32)
    q5 = jax.block_until_ready(fwd(state5))
    assert q5.shape == (5, action_dim)
    np.testing.assert_allclose(np.asarray(q5),
                               np.asarray(_reference_forward_f32(state5, params)),
                               rtol=5e-2, atol=5e-2)

    print("KERNEL_OK")
</pallas_src>

<mosaic_0001>
module attributes {stable_mosaic.version = 11 : i64} {
  func.func @_mlp_kernel(%arg0: i32, %arg1: memref<32x13xf32, #tpu.memory_space<vmem>>, %arg2: memref<13x128xbf16, #tpu.memory_space<vmem>>, %arg3: memref<1x128xf32, #tpu.memory_space<vmem>>, %arg4: memref<128x128xbf16, #tpu.memory_space<vmem>>, %arg5: memref<1x128xf32, #tpu.memory_space<vmem>>, %arg6: memref<128x128xbf16, #tpu.memory_space<vmem>>, %arg7: memref<1x128xf32, #tpu.memory_space<vmem>>, %arg8: memref<32x128xf32, #tpu.memory_space<vmem>>) attributes {dimension_semantics = [#tpu.dimension_semantics<parallel>], iteration_bounds = array<i64: 1>, scalar_prefetch = 0 : i64, scratch_operands = 0 : i64, tpu.core_type = #tpu.core_type<tc>, window_params = [{transform_indices = @transform_0, window_bounds = array<i64: 32, 13>}, {pipeline_mode = #tpu.pipeline_mode<synchronous>, transform_indices = @transform_1, window_bounds = array<i64: 13, 128>}, {pipeline_mode = #tpu.pipeline_mode<synchronous>, transform_indices = @transform_2, window_bounds = array<i64: 1, 128>}, {pipeline_mode = #tpu.pipeline_mode<synchronous>, transform_indices = @transform_3, window_bounds = array<i64: 128, 128>}, {pipeline_mode = #tpu.pipeline_mode<synchronous>, transform_indices = @transform_4, window_bounds = array<i64: 1, 128>}, {pipeline_mode = #tpu.pipeline_mode<synchronous>, transform_indices = @transform_5, window_bounds = array<i64: 128, 128>}, {pipeline_mode = #tpu.pipeline_mode<synchronous>, transform_indices = @transform_6, window_bounds = array<i64: 1, 128>}, {transform_indices = @transform_7, window_bounds = array<i64: 32, 128>}]} {
    %c0 = arith.constant 0 : index
    %c0_0 = arith.constant 0 : index
    %0 = vector.load %arg1[%c0, %c0_0] : memref<32x13xf32, #tpu.memory_space<vmem>>, vector<32x13xf32>
    %1 = arith.truncf %0 : vector<32x13xf32> to vector<32x13xbf16>
    %c0_1 = arith.constant 0 : index
    %c0_2 = arith.constant 0 : index
    %2 = vector.load %arg2[%c0_1, %c0_2] : memref<13x128xbf16, #tpu.memory_space<vmem>>, vector<13x128xbf16>
    %cst = arith.constant dense<0.000000e+00> : vector<32x128xf32>
    %3 = tpu.matmul %1, %2, %cst {dimension_numbers = #tpu.dot_dimension_numbers<[1], [0], [0], [1], [0, 0, 1, 1], [], []>} : vector<32x13xbf16>, vector<13x128xbf16>, vector<32x128xf32> -> vector<32x128xf32>
    %c0_3 = arith.constant 0 : index
    %c0_4 = arith.constant 0 : index
    %4 = vector.load %arg3[%c0_3, %c0_4] : memref<1x128xf32, #tpu.memory_space<vmem>>, vector<1x128xf32>
    %5 = vector.broadcast %4 : vector<1x128xf32> to vector<32x128xf32>
    %6 = arith.addf %3, %5 : vector<32x128xf32>
    %cst_5 = arith.constant 0.000000e+00 : f32
    %7 = vector.broadcast %cst_5 : f32 to vector<32x128xf32>
    %8 = arith.maximumf %6, %7 : vector<32x128xf32>
    %9 = arith.truncf %8 : vector<32x128xf32> to vector<32x128xbf16>
    %c0_6 = arith.constant 0 : index
    %c0_7 = arith.constant 0 : index
    %10 = vector.load %arg4[%c0_6, %c0_7] : memref<128x128xbf16, #tpu.memory_space<vmem>>, vector<128x128xbf16>
    %cst_8 = arith.constant dense<0.000000e+00> : vector<32x128xf32>
    %11 = tpu.matmul %9, %10, %cst_8 {dimension_numbers = #tpu.dot_dimension_numbers<[1], [0], [0], [1], [0, 0, 1, 1], [], []>} : vector<32x128xbf16>, vector<128x128xbf16>, vector<32x128xf32> -> vector<32x128xf32>
    %c0_9 = arith.constant 0 : index
    %c0_10 = arith.constant 0 : index
    %12 = vector.load %arg5[%c0_9, %c0_10] : memref<1x128xf32, #tpu.memory_space<vmem>>, vector<1x128xf32>
    %13 = vector.broadcast %12 : vector<1x128xf32> to vector<32x128xf32>
    %14 = arith.addf %11, %13 : vector<32x128xf32>
    %cst_11 = arith.constant 0.000000e+00 : f32
    %15 = vector.broadcast %cst_11 : f32 to vector<32x128xf32>
    %16 = arith.maximumf %14, %15 : vector<32x128xf32>
    %17 = arith.truncf %16 : vector<32x128xf32> to vector<32x128xbf16>
    %c0_12 = arith.constant 0 : index
    %c0_13 = arith.constant 0 : index
    %18 = vector.load %arg6[%c0_12, %c0_13] : memref<128x128xbf16, #tpu.memory_space<vmem>>, vector<128x128xbf16>
    %cst_14 = arith.constant dense<0.000000e+00> : vector<32x128xf32>
    %19 = tpu.matmul %17, %18, %cst_14 {dimension_numbers = #tpu.dot_dimension_numbers<[1], [0], [0], [1], [0, 0, 1, 1], [], []>} : vector<32x128xbf16>, vector<128x128xbf16>, vector<32x128xf32> -> vector<32x128xf32>
    %c0_15 = arith.constant 0 : index
    %c0_16 = arith.constant 0 : index
    %20 = vector.load %arg7[%c0_15, %c0_16] : memref<1x128xf32, #tpu.memory_space<vmem>>, vector<1x128xf32>
    %21 = vector.broadcast %20 : vector<1x128xf32> to vector<32x128xf32>
    %22 = arith.addf %19, %21 : vector<32x128xf32>
    %c0_17 = arith.constant 0 : index
    %c0_18 = arith.constant 0 : index
    %23 = vector.load %arg8[%c0_17, %c0_18] : memref<32x128xf32, #tpu.memory_space<vmem>>, vector<32x128xf32>
    tpu.vector_store %arg8[%c0_17, %c0_18], %22 {strides = array<i32>} : memref<32x128xf32, #tpu.memory_space<vmem>>, vector<32x128xf32>,
    return
  }
  func.func @transform_0(%arg0: i32) -> (i32, i32) {
    %c0_i32 = arith.constant 0 : i32
    %c0_i32_0 = arith.constant 0 : i32
    return %arg0, %c0_i32 : i32, i32
  }
  func.func @transform_1(%arg0: i32) -> (i32, i32) {
    %c0_i32 = arith.constant 0 : i32
    %c0_i32_0 = arith.constant 0 : i32
    %c0_i32_1 = arith.constant 0 : i32
    return %c0_i32, %c0_i32_0 : i32, i32
  }
  func.func @transform_2(%arg0: i32) -> (i32, i32) {
    %c0_i32 = arith.constant 0 : i32
    %c0_i32_0 = arith.constant 0 : i32
    %c0_i32_1 = arith.constant 0 : i32
    return %c0_i32, %c0_i32_0 : i32, i32
  }
  func.func @transform_3(%arg0: i32) -> (i32, i32) {
    %c0_i32 = arith.constant 0 : i32
    %c0_i32_0 = arith.constant 0 : i32
    %c0_i32_1 = arith.constant 0 : i32
    return %c0_i32, %c0_i32_0 : i32, i32
  }
  func.func @transform_4(%arg0: i32) -> (i32, i32) {
    %c0_i32 = arith.constant 0 : i32
    %c0_i32_0 = arith.constant 0 : i32
    %c0_i32_1 = arith.constant 0 : i32
    return %c0_i32, %c0_i32_0 : i32, i32
  }
  func.func @transform_5(%arg0: i32) -> (i32, i32) {
    %c0_i32 = arith.constant 0 : i32
    %c0_i32_0 = arith.constant 0 : i32
    %c0_i32_1 = arith.constant 0 : i32
    return %c0_i32, %c0_i32_0 : i32, i32
  }
  func.func @transform_6(%arg0: i32) -> (i32, i32) {
    %c0_i32 = arith.constant 0 : i32
    %c0_i32_0 = arith.constant 0 : i32
    %c0_i32_1 = arith.constant 0 : i32
    return %c0_i32, %c0_i32_0 : i32, i32
  }
  func.func @transform_7(%arg0: i32) -> (i32, i32) {
    %c0_i32 = arith.constant 0 : i32
    %c0_i32_0 = arith.constant 0 : i32
    return %arg0, %c0_i32 : i32, i32
  }
}

</mosaic_0001>

<bundles_post_ra>
// kernel: _lambda_.1
= control target key start
LH: loop header
LB: loop body
LE: loop exit
PB: predicated region body
PF: predicated region fallthrough
CT: control target
= control target key end

     0   :  { %12 = vsyncpa [#allocation3], 0  ;;  %s644_s0 = inlined_call_operand.vmem [shape: f32[32,13], index: 0, kind: input, shape index: {}]   ;;  %s645_s1 = inlined_call_operand.vmem [shape: bf16[13,128], index: 1, kind: input, shape index: {}]   ;;  %s646_s2 = inlined_call_operand.vmem [shape: f32[1,128], index: 2, kind: input, shape index: {}, may-alias: {2,4,6}]   ;;  %s647_s3 = inlined_call_operand.hbm [shape: bf16[128,128], index: 3, kind: input, shape index: {}]   ;;  %s648_s4 = inlined_call_operand.vmem [shape: f32[1,128], index: 4, kind: input, shape index: {}, may-alias: {2,4,6}]   ;;  %s649_s5 = inlined_call_operand.hbm [shape: bf16[128,128], index: 5, kind: input, shape index: {}]   ;;  %s650_s6 = inlined_call_operand.vmem [shape: f32[1,128], index: 6, kind: input, shape index: {}, may-alias: {2,4,6}]   ;;  %s651_s7 = inlined_call_operand.vmem [shape: f32[32,128], index: 7, kind: output, shape index: {}]  }
   0x1   :  { %13 = vsyncpa [#allocation5], 0  ;;  %s557_s24 = smov [#allocation2]  }
   0x2   :  { %s25_s25 = sshll.u32 %s557_s24, 4  ;;  %s26_s25 = int_to_ptr.vmem [resolvable:$true] %s25_s25 }
   0x3   :  { %s521_s26 = scalar_lea.vmem %s26_s25, 1024  ;;  %p526_p1 = scmp.lt.s32.totalorder %s26_s25, %s26_s25 }
   0x4   :  { %p522_p0 = scmp.ne.s32.totalorder %s26_s25, %s521_s26  ;;  %p527_p2 = scmp.lt.s32.totalorder %s521_s26, %s521_s26 }
   0x6   :  { %p528_p3 = por %p527_p2, %p526_p1 }
   0x8   :  { %p529_p4 = pnand %p528_p3, %p522_p0 }
   0xa   :  { %532 = shalt.err (!%p529_p4)
}
   0xb   :  { %s558_s27 = smov 64   ;;  %s559_s28 = smov 4  }
   0xc   :  { %31 = dma.hbm_to_vmem [thread:$0]  %s647_s3, 1024, %s26_s25, [#allocation3], %s558_s27, %s558_s27, %s559_s28  }
   0xd   :  { %s560_s8 = smov [#allocation4]  }
   0xe   :  { %s39_s9 = sshll.u32 %s560_s8, 4  ;;  %s40_s9 = int_to_ptr.vmem [resolvable:$true] %s39_s9 }
   0xf   :  { %s541_s10 = scalar_lea.vmem %s40_s9, 1024  ;;  %p546_p6 = scmp.lt.s32.totalorder %s40_s9, %s40_s9 }
  0x10   :  { %p542_p5 = scmp.ne.s32.totalorder %s40_s9, %s541_s10  ;;  %p547_p7 = scmp.lt.s32.totalorder %s541_s10, %s541_s10 }
  0x12   :  { %p548_p8 = por %p547_p7, %p546_p6 }
  0x14   :  { %p549_p9 = pnand %p548_p8, %p542_p5 }
  0x16   :  { %552 = shalt.err (!%p549_p9)
}
  0x17   :  { %45 = dma.hbm_to_vmem [thread:$0]  %s649_s5, 1024, %s40_s9, [#allocation5], %s558_s27, %s558_s27, %s559_s28  }
  0x18   :  { %553 = dma.done.wait [#allocation3], 1024  }
  0x19   :  { %554 = vsyncadd [#allocation3], 4294966272 }
  0x1a   :  { %555 = dma.done.wait [#allocation5], 1024  }
  0x1b   :  { %556 = vsyncadd [#allocation5], 4294966272  ;;  %vm82_vm0 = vcmask 1045504   ;;  %vm83_vm1 = vcmask 1046528   ;;  %v561_v0 = vmov 65535   ;;  %v55_v4 = vld [vmem:[%s644_s0] sm:$0xff] }
  0x1c   :  { %v84_v1 = vsel %vm82_vm0, 4294967295, %v561_v0  ;;  %v496_v3 = vld [vmem:[%s645_s1] sm:$0x7f]   ;;  %v56_v5 = vld [vmem:[%s644_s0 + $0x8] sm:$0xff]  ;;  %vm75_vm2 = vcmask 105472   ;;  %v57_v6 = vld [vmem:[%s644_s0 + $0x10] sm:$0xff] }
  0x1d   :  { %v85_v2 = vsel %vm83_vm1, %v84_v1, 0  ;;  %v59_v8 = vpack.c.bf16 %v56_v5, %v55_v4  ;;  %v58_v9 = vld [vmem:[%s644_s0 + $0x18] sm:$0xff]  ;;  %v498_v12 = vld [vmem:[#allocation2 + $0x30] sm:$0xff]   ;;  %v499_v13 = vld [vmem:[#allocation2 + $0x28] sm:$0xff]  }
  0x1e   :  { %v87_v7 = vand.u32 %v496_v3, %v85_v2  ;;  %v497_v10 = vld [vmem:[#allocation2 + $0x38] sm:$0xff]   ;;  %v60_v11 = vpack.c.bf16 %v58_v9, %v57_v6  ;;  %v500_v14 = vld [vmem:[#allocation2 + $0x20] sm:$0xff]   ;;  %v502_v16 = vld [vmem:[#allocation2 + $0x10] sm:$0xff]  }
  0x1f   :  { %447 = vmatprep.mubr.msk.bf16.mxu0 %vm75_vm2, %v59_v8  ;;  %451 = vmatprep.subr.bf16.mxu1 %v497_v10  ;;  %v501_v15 = vld [vmem:[#allocation2 + $0x18] sm:$0xff]   ;;  %v503_v17 = vld [vmem:[#allocation2 + $0x8] sm:$0xff]   ;;  %v504_v18 = vld [vmem:[#allocation2] sm:$0xff]  }
  0x20   :  { %445 = vmatprep.subr.bf16.mxu0 %v87_v7  ;;  %452 = vmatpush3.bf16.msra.mxu1 %v497_v10  ;;  %v505_v19 = vld [vmem:[#allocation4 + $0x38] sm:$0xff]   ;;  %v506_v20 = vld [vmem:[#allocation4 + $0x30] sm:$0xff]   ;;  %v507_v21 = vld [vmem:[#allocation4 + $0x28] sm:$0xff]  }
  0x21   :  { %446 = vmatpush3.bf16.msra.mxu0 %v87_v7  ;;  %453 = vmatprep.subr.bf16.mxu1 %v498_v12  ;;  %v508_v22 = vld [vmem:[#allocation4 + $0x20] sm:$0xff]   ;;  %v509_v23 = vld [vmem:[#allocation4 + $0x18] sm:$0xff]   ;;  %v510_v39 = vld [vmem:[#allocation4 + $0x10] sm:$0xff]  }
  0x22   :  { %471 = vmatprep.subr.bf16.mxu0 %v505_v19  ;;  %v400_v26 = vld [vmem:[%s646_s2] ss:$0 sm:$0xff]  ;;  %v511_v40 = vld [vmem:[#allocation4 + $0x8] sm:$0xff]  }
  0x23   :  { %v512_v41 = vld [vmem:[#allocation4] sm:$0xff]  }
  0x24   :  { %448 = vmatmul.mubr.msk.bf16.vlgmr.msra.gmra.mxu0 %vm75_vm2, %v60_v11  ;;  %454 = vmatpush3.bf16.msra.mxu1 %v498_v12  ;;  %v404_v44 = vld [vmem:[%s648_s4] ss:$0 sm:$0xff] }
  0x25   :  { %455 = vmatprep.subr.bf16.mxu1 %v499_v13  ;;  %472 = vmatpush3.bf16.msra.mxu0 %v505_v19  ;;  %v413_v57 = vld [vmem:[%s650_s6] ss:$0 sm:$0xff] }
  0x26   :  { %473 = vmatprep.subr.bf16.mxu0 %v506_v20 }
  0x28   :  { %456 = vmatpush3.bf16.msra.mxu1 %v499_v13 }
  0x29   :  { %457 = vmatprep.subr.bf16.mxu1 %v500_v14  ;;  %474 = vmatpush3.bf16.msra.mxu0 %v506_v20 }
  0x2a   :  { %475 = vmatprep.subr.bf16.mxu0 %v507_v21 }
  0x2c   :  { %458 = vmatpush3.bf16.msra.mxu1 %v500_v14 }
  0x2d   :  { %459 = vmatprep.subr.bf16.mxu1 %v501_v15  ;;  %476 = vmatpush3.bf16.msra.mxu0 %v507_v21 }
  0x2e   :  { %477 = vmatprep.subr.bf16.mxu0 %v508_v22 }
  0x30   :  { %460 = vmatpush3.bf16.msra.mxu1 %v501_v15 }
  0x31   :  { %461 = vmatprep.subr.bf16.mxu1 %v502_v16  ;;  %478 = vmatpush3.bf16.msra.mxu0 %v508_v22 }
  0x32   :  { %479 = vmatprep.subr.bf16.mxu0 %v509_v23 }
  0x34   :  { %462 = vmatpush3.bf16.msra.mxu1 %v502_v16 }
  0x35   :  { %463 = vmatprep.subr.bf16.mxu1 %v503_v17  ;;  %480 = vmatpush3.bf16.msra.mxu0 %v509_v23 }
  0x36   :  { %481 = vmatprep.subr.bf16.mxu0 %v510_v39 }
  0x38   :  { %464 = vmatpush3.bf16.msra.mxu1 %v503_v17 }
  0x39   :  { %465 = vmatprep.subr.bf16.mxu1 %v504_v18  ;;  %482 = vmatpush3.bf16.msra.mxu0 %v510_v39 }
  0x3a   :  { %483 = vmatprep.subr.bf16.mxu0 %v511_v40 }
  0x3c   :  { %466 = vmatpush3.bf16.msra.mxu1 %v504_v18 }
  0x3d   :  { %484 = vmatpush3.bf16.msra.mxu0 %v511_v40 }
  0x3e   :  { %485 = vmatprep.subr.bf16.mxu0 %v512_v41 }
  0x41   :  { %486 = vmatpush3.bf16.msra.mxu0 %v512_v41 }
  0xe4   :  { %v449_v24 = vpop.f32.mrf.mxu0 }
  0xe5   :  { %v132_v30 = vadd.f32 %v449_v24, %v400_v26 }
  0xe6   :  { %v123_v25 = vpop.f32.mrf.mxu0 }
  0xe7   :  { %v124_v28 = vadd.f32 %v400_v26, %v123_v25  ;;  %v140_v36 = vmax.f32 %v132_v30, 0.0 }
  0xe8   :  { %v450_v27 = vpop.f32.mrf.mxu0 }
  0xe9   :  { %v135_v29 = vadd.f32 %v450_v27, %v400_v26  ;;  %v138_v34 = vmax.f32 %v124_v28, 0.0 }
  0xea   :  { %v126_v31 = vpop.f32.mrf.mxu0 }
  0xeb   :  { %v127_v32 = vadd.f32 %v400_v26, %v126_v31  ;;  %v141_v33 = vmax.f32 %v135_v29, 0.0 }
  0xed   :  { %v139_v35 = vmax.f32 %v127_v32, 0.0  ;;  %v143_v38 = vpack.c.bf16 %v141_v33, %v140_v36 }
  0xef   :  { %v142_v37 = vpack.c.bf16 %v139_v35, %v138_v34 }
  0xf1   :  { %467 = vmatprep.mubr.bf16.mxu1 %v142_v37 }
  0xf2   :  { %468 = vmatmul.mubr.bf16.vlgmr.msra.gmra.mxu1 %v143_v38 }
 0x1b2   :  { %v469_v42 = vpop.f32.mrf.mxu1 }
 0x1b3   :  { %v258_v48 = vadd.f32 %v469_v42, %v404_v44 }
 0x1b4   :  { %v249_v43 = vpop.f32.mrf.mxu1 }
 0x1b5   :  { %v250_v46 = vadd.f32 %v404_v44, %v249_v43  ;;  %v266_v54 = vmax.f32 %v258_v48, 0.0 }
 0x1b6   :  { %v470_v45 = vpop.f32.mrf.mxu1 }
 0x1b7   :  { %v261_v47 = vadd.f32 %v470_v45, %v404_v44  ;;  %v264_v52 = vmax.f32 %v250_v46, 0.0 }
 0x1b8   :  { %v252_v49 = vpop.f32.mrf.mxu1 }
 0x1b9   :  { %v253_v50 = vadd.f32 %v404_v44, %v252_v49  ;;  %v267_v51 = vmax.f32 %v261_v47, 0.0 }
 0x1bb   :  { %v265_v53 = vmax.f32 %v253_v50, 0.0  ;;  %v269_v56 = vpack.c.bf16 %v267_v51, %v266_v54 }
 0x1bd   :  { %v268_v55 = vpack.c.bf16 %v265_v53, %v264_v52 }
 0x1bf   :  { %487 = vmatprep.mubr.bf16.mxu0 %v268_v55 }
 0x1c0   :  { %488 = vmatmul.mubr.bf16.vlgmr.msra.gmra.mxu0 %v269_v56 }
 0x280   :  { %v489_v58 = vpop.f32.mrf.mxu0 }
 0x281   :  { %v384_v59 = vadd.f32 %v489_v58, %v413_v57 }
 0x282   :  { %v375_v60 = vpop.f32.mrf.mxu0 }
 0x283   :  { %392 = vst [vmem:[%s651_s7 + $0x10] sm:$0xff] %v384_v59  ;;  %v376_v61 = vadd.f32 %v413_v57, %v375_v60 }
 0x284   :  { %v490_v62 = vpop.f32.mrf.mxu0 }
 0x285   :  { %390 = vst [vmem:[%s651_s7] sm:$0xff] %v376_v61  ;;  %v387_v63 = vadd.f32 %v490_v62, %v413_v57 }
 0x286   :  { %v378_v0 = vpop.f32.mrf.mxu0 }
 0x287   :  { %393 = vst [vmem:[%s651_s7 + $0x18] sm:$0xff] %v387_v63  ;;  %v379_v1 = vadd.f32 %v413_v57, %v378_v0 }
 0x289   :  { %391 = vst [vmem:[%s651_s7 + $0x8] sm:$0xff] %v379_v1 }
 0x28a   :  { %398 = vsyncpa [#allocation3], 1 }
 0x28b   :  { %399 = vsyncpa [#allocation5], 1 }

</bundles_post_ra>
